<compile_context>
chip_gen: v7x
topology: tpu7x:2x2x1
jax: 0.10.0
libtpu: 0.0.40
codegen_flags: <defaults>
</compile_context>

<pallas_src>
import functools

import jax
import jax.numpy as jnp
from jax.experimental import pallas as pl
from jax.experimental.pallas import tpu as pltpu


def _round_up(x, m):
    return (x + m - 1) // m * m


def _vmem_budget_bytes():
    """Generation-aware VMEM ceiling (~85% of per-core capacity)."""
    cap = None
    try:
        info = pltpu.get_tpu_info()
        cap = getattr(info, "vmem_capacity_bytes", None)
    except Exception:
        cap = None
    if not cap:
        cap = 64 * 1024 * 1024  # conservative fallback (v7x per-TC VMEM)
    return int(cap * 0.85)


def _invariant_spec(shape, index_map):
    """BlockSpec for a grid-invariant operand: single-buffer it if supported."""
    if hasattr(pl, "Buffered"):
        try:
            return pl.BlockSpec(shape, index_map, pipeline_mode=pl.Buffered(1))
        except TypeError:
            pass
    return pl.BlockSpec(shape, index_map)


def _buffered_spec(shape, index_map, buffers):
    """BlockSpec with a requested buffer count (e.g. 3 if the x DMA is exposed
    on v5e); falls back to the default double-buffering."""
    if buffers != 2 and hasattr(pl, "Buffered"):
        try:
            return pl.BlockSpec(shape, index_map, pipeline_mode=pl.Buffered(buffers))
        except TypeError:
            pass
    return pl.BlockSpec(shape, index_map)


def _layernorm_relu(y, gamma, beta, out_dim):
    """LayerNorm (biased var, eps=1e-5) + affine + ReLU on an f32 tile whose
    last dim may be zero-padded beyond out_dim (pad cols of y are exactly 0)."""
    out_dim_p = y.shape[-1]
    inv_n = jnp.float32(1.0 / out_dim)
    # Pad columns of y are exactly zero (W^T / bias pads are zero), so the raw
    # row-sum is already the masked sum.
    mean = jnp.sum(y, axis=-1, keepdims=True) * inv_n
    if out_dim_p == out_dim:
        cent = y - mean
    else:
        # Keep the mask on `cent` (not y) so pad columns don't enter the
        # variance; also keeps NaN/Inf in x from poisoning the statistics.
        col = jax.lax.broadcasted_iota(jnp.int32, y.shape, dimension=1)
        cent = jnp.where(col < out_dim, y - mean, 0.0)
    var = jnp.sum(cent * cent, axis=-1, keepdims=True) * inv_n
    yn = cent * jax.lax.rsqrt(var + jnp.float32(1e-5))
    yn = yn * gamma + beta
    return jnp.maximum(yn, 0.0)


def _concat_block_kernel(x_ref, w_ref, b_ref, g_ref, beta_ref, o_ref, *, out_dim):
    # x_ref: (tm, K) native dtype     w_ref: (K, out_dim_p) native dtype
    # b/g/beta: (1, out_dim_p) f32    o_ref: (tm, out_dim_p)
    y = jnp.dot(x_ref[...], w_ref[...], preferred_element_type=jnp.float32)
    y = y + b_ref[...]
    o_ref[...] = _layernorm_relu(y, g_ref[...], beta_ref[...], out_dim).astype(o_ref.dtype)


def _concat_block_kernel_kt(x_ref, w_ref, b_ref, g_ref, beta_ref, o_ref, acc_ref, *, out_dim):
    # K-tiled variant: accumulate partial matmuls in f32 scratch, run
    # bias + LayerNorm + ReLU in the last-K epilogue.
    ki = pl.program_id(1)

    @pl.when(ki == 0)
    def _():
        acc_ref[...] = jnp.zeros_like(acc_ref)

    acc_ref[...] += jnp.dot(x_ref[...], w_ref[...], preferred_element_type=jnp.float32)

    @pl.when(ki == pl.num_programs(1) - 1)
    def _():
        y = acc_ref[...] + b_ref[...]
        o_ref[...] = _layernorm_relu(y, g_ref[...], beta_ref[...], out_dim).astype(o_ref.dtype)


def prepare_concat_block_params(weight, bias, gamma, beta, *, use_bf16_matmul=False):
    """One-time parameter prep (hoisted out of the per-call path).

    weight: (out_dim, K) torch Linear convention.  Returns a dict with W^T in
    (K, out_dim_p) layout, out_dim_p padded to a multiple of 128 (zeros), LN
    params as f32 (1, out_dim_p), and optional bf16 cast of W^T for the MXU.
    """
    out_dim, k = weight.shape
    out_dim_p = max(_round_up(out_dim, 128), 128)
    w_t = jnp.transpose(weight)  # (K, out_dim)
    if use_bf16_matmul and w_t.dtype == jnp.float32:
        w_t = w_t.astype(jnp.bfloat16)
    if out_dim_p != out_dim:
        pad = out_dim_p - out_dim
        w_t = jnp.pad(w_t, ((0, 0), (0, pad)))
        bias = jnp.pad(bias, (0, pad))
        gamma = jnp.pad(gamma, (0, pad))
        beta = jnp.pad(beta, (0, pad))
    return {
        "w_t": w_t,
        "bias": bias.reshape(1, out_dim_p).astype(jnp.float32),
        "gamma": gamma.reshape(1, out_dim_p).astype(jnp.float32),
        "beta": beta.reshape(1, out_dim_p).astype(jnp.float32),
        "out_dim": out_dim,
        "k": k,
    }


def _pick_tk(k, tm, out_dim_p, isx, isw, iso, budget):
    """Largest 128-multiple K tile whose footprint (with 25% headroom) fits."""
    fixed = (2 * tm * out_dim_p * iso      # output tiles (double-buffered)
             + tm * out_dim_p * 4          # f32 accumulator scratch
             + 3 * out_dim_p * 4)          # bias / gamma / beta
    tk = _round_up(k, 128)
    while tk > 128:
        per_k = 2 * tm * tk * isx + 2 * tk * out_dim_p * isw
        if int((fixed + per_k) * 1.25) <= budget:
            break
        tk = _round_up(max(128, tk // 2), 128)
    return tk


def concat_block_forward(x, params, *, num_feat, tm=512, use_bf16_matmul=False,
                         force_k_tile=None, x_buffers=2):
    """x: (N, in_dim) with N % num_feat == 0; params from prepare_concat_block_params."""
    n, in_dim = x.shape
    assert n % num_feat == 0, (n, num_feat)
    m = n // num_feat
    k = in_dim * num_feat
    assert k == params["k"], (k, params["k"])
    out_dim = params["out_dim"]
    w_t = params["w_t"]
    b2, g2, be2 = params["bias"], params["gamma"], params["beta"]
    out_dim_p = w_t.shape[1]
    out_dtype = x.dtype

    x2 = x.reshape(m, k)
    if use_bf16_matmul and x2.dtype == jnp.float32:
        # bf16 on the MXU (v6e/v7x are bf16-native), f32 accumulation.
        x2 = x2.astype(jnp.bfloat16)

    isx = jnp.dtype(x2.dtype).itemsize
    isw = jnp.dtype(w_t.dtype).itemsize
    iso = jnp.dtype(out_dtype).itemsize

    # Row tile: sublane-aligned, large enough to fill the MXU M dim, but split
    # into >= 2 grid steps whenever m allows so both v7x TensorCores get work
    # (one extra grid step is negligible on single-TC v5e/v6e).
    row_align = {4: 8, 2: 16, 1: 32}.get(isx, 8)
    m_aligned = _round_up(m, row_align)
    tm_cap = min(tm, m_aligned)
    if m_aligned >= 2 * row_align:
        tm_cap = min(tm_cap, _round_up((m_aligned + 1) // 2, row_align))
    tm_eff = max(row_align, _round_up(tm_cap, row_align))
    m_pad = _round_up(m, tm_eff)
    if m_pad != m:
        x2 = jnp.pad(x2, ((0, m_pad - m), (0, 0)))
    grid_m = m_pad // tm_eff

    budget = _vmem_budget_bytes()
    # Single-shot footprint: double-buffered x/out tiles, single-buffered W^T,
    # tiny LN params.
    est = (2 * tm_eff * k * isx
           + 2 * tm_eff * out_dim_p * iso
           + k * out_dim_p * isw
           + 3 * out_dim_p * 4)
    need_ktile = (force_k_tile is not None) or int(est * 1.25) > budget

    if not need_ktile:
        vmem_limit = int(min(max(int(est * 1.25), 32 * 1024 * 1024), budget))
        kernel = functools.partial(_concat_block_kernel, out_dim=out_dim)
        out_p = pl.pallas_call(
            kernel,
            out_shape=jax.ShapeDtypeStruct((m_pad, out_dim_p), out_dtype),
            grid_spec=pltpu.PrefetchScalarGridSpec(
                num_scalar_prefetch=0,
                grid=(grid_m,),
                in_specs=[
                    _buffered_spec((tm_eff, k), lambda i: (i, 0), x_buffers),  # x rows
                    _invariant_spec((k, out_dim_p), lambda i: (0, 0)),         # W^T
                    _invariant_spec((1, out_dim_p), lambda i: (0, 0)),         # bias
                    _invariant_spec((1, out_dim_p), lambda i: (0, 0)),         # gamma
                    _invariant_spec((1, out_dim_p), lambda i: (0, 0)),         # beta
                ],
                out_specs=pl.BlockSpec((tm_eff, out_dim_p), lambda i: (i, 0)),
            ),
            compiler_params=pltpu.CompilerParams(
                dimension_semantics=("parallel",),
                vmem_limit_bytes=vmem_limit),
        )(x2, w_t, b2, g2, be2)
    else:
        # K-tiled fallback (weight too large for single-shot VMEM residency,
        # or forced for testing).
        if force_k_tile is not None:
            tk = max(128, _round_up(force_k_tile, 128))
        else:
            tk = _pick_tk(k, tm_eff, out_dim_p, isx, isw, iso, budget)
        k_pad = _round_up(k, tk)
        if k_pad != k:
            # Exceptional path only: zero K-padding (zeros add nothing to the dot).
            x2 = jnp.pad(x2, ((0, 0), (0, k_pad - k)))
            w_t = jnp.pad(w_t, ((0, k_pad - k), (0, 0)))
        grid_k = k_pad // tk
        est_t = (2 * tm_eff * tk * isx
                 + 2 * tk * out_dim_p * isw
                 + 2 * tm_eff * out_dim_p * iso
                 + tm_eff * out_dim_p * 4
                 + 3 * out_dim_p * 4)
        vmem_limit = int(min(max(int(est_t * 1.25), 32 * 1024 * 1024), budget))
        kernel = functools.partial(_concat_block_kernel_kt, out_dim=out_dim)
        out_p = pl.pallas_call(
            kernel,
            out_shape=jax.ShapeDtypeStruct((m_pad, out_dim_p), out_dtype),
            grid_spec=pltpu.PrefetchScalarGridSpec(
                num_scalar_prefetch=0,
                grid=(grid_m, grid_k),
                in_specs=[
                    _buffered_spec((tm_eff, tk), lambda i, kk: (i, kk), x_buffers),
                    pl.BlockSpec((tk, out_dim_p), lambda i, kk: (kk, 0)),
                    _invariant_spec((1, out_dim_p), lambda i, kk: (0, 0)),
                    _invariant_spec((1, out_dim_p), lambda i, kk: (0, 0)),
                    _invariant_spec((1, out_dim_p), lambda i, kk: (0, 0)),
                ],
                out_specs=pl.BlockSpec((tm_eff, out_dim_p), lambda i, kk: (i, 0)),
                scratch_shapes=[pltpu.VMEM((tm_eff, out_dim_p), jnp.float32)],
            ),
            compiler_params=pltpu.CompilerParams(
                dimension_semantics=("parallel", "arbitrary"),
                vmem_limit_bytes=vmem_limit),
        )(x2, w_t, b2, g2, be2)

    # Only slice when padding actually occurred (avoids an extra HBM pass).
    if m_pad != m or out_dim_p != out_dim:
        return out_p[:m, :out_dim]
    return out_p


def reference_forward(x, weight, bias, gamma, beta, *, num_feat):
    m = x.shape[0] // num_feat
    x2 = x.reshape(m, -1).astype(jnp.float32)
    y = x2 @ weight.T.astype(jnp.float32) + bias
    mean = jnp.mean(y, axis=-1, keepdims=True)
    var = jnp.mean((y - mean) ** 2, axis=-1, keepdims=True)
    yn = (y - mean) / jnp.sqrt(var + 1e-5)
    yn = yn * gamma + beta
    return jnp.maximum(yn, 0.0)


def _make_params(key, num_feat, in_dim, out_dim):
    kw, kb, kg, kbt = jax.random.split(key, 4)
    k_fan = in_dim * num_feat
    bound = 1.0 / jnp.sqrt(k_fan)
    weight = jax.random.uniform(kw, (out_dim, k_fan), jnp.float32, -bound, bound)
    bias = jax.random.uniform(kb, (out_dim,), jnp.float32, -bound, bound)
    gamma = jnp.ones((out_dim,), jnp.float32) + 0.01 * jax.random.normal(kg, (out_dim,))
    beta = 0.01 * jax.random.normal(kbt, (out_dim,), dtype=jnp.float32)
    return weight, bias, gamma, beta


if __name__ == "__main__":
    key = jax.random.PRNGKey(0)
    k1, k2, k3, kx1, kx2, kx3 = jax.random.split(key, 6)

    # Case 1: aligned shapes (num_feat=4, in_dim=32, out_dim=128, N=32 rows).
    num_feat, in_dim, out_dim, n_rows = 4, 32, 128, 32
    x = jax.random.normal(kx1, (n_rows, in_dim), dtype=jnp.float32)
    w, b, g, bt = _make_params(k1, num_feat, in_dim, out_dim)
    prep = prepare_concat_block_params(w, b, g, bt)

    out = concat_block_forward(x, prep, num_feat=num_feat)
    out = jax.block_until_ready(out)
    ref = reference_forward(x, w, b, g, bt, num_feat=num_feat)
    assert out.shape == (n_rows // num_feat, out_dim)
    assert jnp.allclose(out, ref, atol=1e-4, rtol=1e-4), \
        f"case1 max abs err {jnp.max(jnp.abs(out - ref))}"

    # Case 2: ragged rows + non-128 out_dim (row padding + masked LN path).
    num_feat2, in_dim2, out_dim2, n_rows2 = 2, 64, 96, 74   # m=37, K=128
    x2 = jax.random.normal(kx2, (n_rows2, in_dim2), dtype=jnp.float32)
    w2, b2, g2, bt2 = _make_params(k2, num_feat2, in_dim2, out_dim2)
    prep2 = prepare_concat_block_params(w2, b2, g2, bt2)

    out2 = concat_block_forward(x2, prep2, num_feat=num_feat2)
    out2 = jax.block_until_ready(out2)
    ref2 = reference_forward(x2, w2, b2, g2, bt2, num_feat=num_feat2)
    assert out2.shape == (n_rows2 // num_feat2, out_dim2)
    assert jnp.allclose(out2, ref2, atol=1e-4, rtol=1e-4), \
        f"case2 max abs err {jnp.max(jnp.abs(out2 - ref2))}"

    # Case 3: forced K-tiled path (accumulator scratch + last-K LN epilogue).
    num_feat3, in_dim3, out_dim3, n_rows3 = 2, 96, 192, 80  # m=40, K=192
    x3 = jax.random.normal(kx3, (n_rows3, in_dim3), dtype=jnp.float32)
    w3, b3, g3, bt3 = _make_params(k3, num_feat3, in_dim3, out_dim3)
    prep3 = prepare_concat_block_params(w3, b3, g3, bt3)

    out3 = concat_block_forward(x3, prep3, num_feat=num_feat3, force_k_tile=128)
    out3 = jax.block_until_ready(out3)
    ref3 = reference_forward(x3, w3, b3, g3, bt3, num_feat=num_feat3)
    assert out3.shape == (n_rows3 // num_feat3, out_dim3)
    assert jnp.allclose(out3, ref3, atol=1e-4, rtol=1e-4), \
        f"case3 max abs err {jnp.max(jnp.abs(out3 - ref3))}"

    # Case 4: optional bf16-matmul path (looser tolerance; LN math stays f32).
    prep_bf16 = prepare_concat_block_params(w, b, g, bt, use_bf16_matmul=True)
    out4 = concat_block_forward(x, prep_bf16, num_feat=num_feat, use_bf16_matmul=True)
    out4 = jax.block_until_ready(out4)
    assert out4.shape == (n_rows // num_feat, out_dim)
    assert jnp.allclose(out4, ref, atol=1.5e-1, rtol=1.5e-1), \
        f"case4 (bf16) max abs err {jnp.max(jnp.abs(out4 - ref))}"

    print("KERNEL_OK")
</pallas_src>

<mosaic_0001>
module attributes {stable_mosaic.version = 11 : i64} {
  func.func @_concat_block_kernel(%arg0: i32, %arg1: memref<8x128xf32, #tpu.memory_space<vmem>>, %arg2: memref<128x128xf32, #tpu.memory_space<vmem>>, %arg3: memref<1x128xf32, #tpu.memory_space<vmem>>, %arg4: memref<1x128xf32, #tpu.memory_space<vmem>>, %arg5: memref<1x128xf32, #tpu.memory_space<vmem>>, %arg6: memref<8x128xf32, #tpu.memory_space<vmem>>) attributes {dimension_semantics = [#tpu.dimension_semantics<parallel>], iteration_bounds = array<i64: 1>, scalar_prefetch = 0 : i64, scratch_operands = 0 : i64, tpu.core_type = #tpu.core_type<tc>, window_params = [{transform_indices = @transform_0, window_bounds = array<i64: 8, 128>}, {pipeline_mode = #tpu.pipeline_mode<synchronous>, transform_indices = @transform_1, window_bounds = array<i64: 128, 128>}, {pipeline_mode = #tpu.pipeline_mode<synchronous>, transform_indices = @transform_2, window_bounds = array<i64: 1, 128>}, {pipeline_mode = #tpu.pipeline_mode<synchronous>, transform_indices = @transform_3, window_bounds = array<i64: 1, 128>}, {pipeline_mode = #tpu.pipeline_mode<synchronous>, transform_indices = @transform_4, window_bounds = array<i64: 1, 128>}, {transform_indices = @transform_5, window_bounds = array<i64: 8, 128>}]} {
    %c0 = arith.constant 0 : index
    %c0_0 = arith.constant 0 : index
    %0 = vector.load %arg1[%c0, %c0_0] : memref<8x128xf32, #tpu.memory_space<vmem>>, vector<8x128xf32>
    %c0_1 = arith.constant 0 : index
    %c0_2 = arith.constant 0 : index
    %1 = vector.load %arg2[%c0_1, %c0_2] : memref<128x128xf32, #tpu.memory_space<vmem>>, vector<128x128xf32>
    %cst = arith.constant dense<0.000000e+00> : vector<8x128xf32>
    %2 = tpu.matmul %0, %1, %cst {dimension_numbers = #tpu.dot_dimension_numbers<[1], [0], [0], [1], [0, 0, 1, 1], [], []>} : vector<8x128xf32>, vector<128x128xf32>, vector<8x128xf32> -> vector<8x128xf32>
    %c0_3 = arith.constant 0 : index
    %c0_4 = arith.constant 0 : index
    %3 = vector.load %arg3[%c0_3, %c0_4] : memref<1x128xf32, #tpu.memory_space<vmem>>, vector<1x128xf32>
    %4 = vector.broadcast %3 : vector<1x128xf32> to vector<8x128xf32>
    %5 = arith.addf %2, %4 : vector<8x128xf32>
    %c0_5 = arith.constant 0 : index
    %c0_6 = arith.constant 0 : index
    %6 = vector.load %arg4[%c0_5, %c0_6] : memref<1x128xf32, #tpu.memory_space<vmem>>, vector<1x128xf32>
    %c0_7 = arith.constant 0 : index
    %c0_8 = arith.constant 0 : index
    %7 = vector.load %arg5[%c0_7, %c0_8] : memref<1x128xf32, #tpu.memory_space<vmem>>, vector<1x128xf32>
    %cst_9 = arith.constant dense<0.000000e+00> : vector<8xf32>
    %8 = vector.multi_reduction <add>, %5, %cst_9 [1] : vector<8x128xf32> to vector<8xf32>
    %9 = vector.shape_cast %8 : vector<8xf32> to vector<8x1xf32>
    %cst_10 = arith.constant 7.812500e-03 : f32
    %10 = vector.broadcast %cst_10 : f32 to vector<8x1xf32>
    %11 = arith.mulf %9, %10 : vector<8x1xf32>
    %12 = vector.broadcast %11 : vector<8x1xf32> to vector<8x128xf32>
    %13 = arith.subf %5, %12 : vector<8x128xf32>
    %14 = arith.mulf %13, %13 : vector<8x128xf32>
    %cst_11 = arith.constant dense<0.000000e+00> : vector<8xf32>
    %15 = vector.multi_reduction <add>, %14, %cst_11 [1] : vector<8x128xf32> to vector<8xf32>
    %16 = vector.shape_cast %15 : vector<8xf32> to vector<8x1xf32>
    %cst_12 = arith.constant 7.812500e-03 : f32
    %17 = vector.broadcast %cst_12 : f32 to vector<8x1xf32>
    %18 = arith.mulf %16, %17 : vector<8x1xf32>
    %cst_13 = arith.constant 9.99999974E-6 : f32
    %19 = vector.broadcast %cst_13 : f32 to vector<8x1xf32>
    %20 = arith.addf %18, %19 : vector<8x1xf32>
    %21 = math.rsqrt %20 : vector<8x1xf32>
    %22 = vector.broadcast %21 : vector<8x1xf32> to vector<8x128xf32>
    %23 = arith.mulf %13, %22 : vector<8x128xf32>
    %24 = vector.broadcast %6 : vector<1x128xf32> to vector<8x128xf32>
    %25 = arith.mulf %23, %24 : vector<8x128xf32>
    %26 = vector.broadcast %7 : vector<1x128xf32> to vector<8x128xf32>
    %27 = arith.addf %25, %26 : vector<8x128xf32>
    %cst_14 = arith.constant 0.000000e+00 : f32
    %28 = vector.broadcast %cst_14 : f32 to vector<8x128xf32>
    %29 = arith.maximumf %27, %28 : vector<8x128xf32>
    %c0_15 = arith.constant 0 : index
    %c0_16 = arith.constant 0 : index
    %30 = vector.load %arg6[%c0_15, %c0_16] : memref<8x128xf32, #tpu.memory_space<vmem>>, vector<8x128xf32>
    tpu.vector_store %arg6[%c0_15, %c0_16], %29 {strides = array<i32>} : memref<8x128xf32, #tpu.memory_space<vmem>>, vector<8x128xf32>,
    return
  }
  func.func @transform_0(%arg0: i32) -> (i32, i32) {
    %c0_i32 = arith.constant 0 : i32
    %c0_i32_0 = arith.constant 0 : i32
    return %arg0, %c0_i32 : i32, i32
  }
  func.func @transform_1(%arg0: i32) -> (i32, i32) {
    %c0_i32 = arith.constant 0 : i32
    %c0_i32_0 = arith.constant 0 : i32
    %c0_i32_1 = arith.constant 0 : i32
    return %c0_i32, %c0_i32_0 : i32, i32
  }
  func.func @transform_2(%arg0: i32) -> (i32, i32) {
    %c0_i32 = arith.constant 0 : i32
    %c0_i32_0 = arith.constant 0 : i32
    %c0_i32_1 = arith.constant 0 : i32
    return %c0_i32, %c0_i32_0 : i32, i32
  }
  func.func @transform_3(%arg0: i32) -> (i32, i32) {
    %c0_i32 = arith.constant 0 : i32
    %c0_i32_0 = arith.constant 0 : i32
    %c0_i32_1 = arith.constant 0 : i32
    return %c0_i32, %c0_i32_0 : i32, i32
  }
  func.func @transform_4(%arg0: i32) -> (i32, i32) {
    %c0_i32 = arith.constant 0 : i32
    %c0_i32_0 = arith.constant 0 : i32
    %c0_i32_1 = arith.constant 0 : i32
    return %c0_i32, %c0_i32_0 : i32, i32
  }
  func.func @transform_5(%arg0: i32) -> (i32, i32) {
    %c0_i32 = arith.constant 0 : i32
    %c0_i32_0 = arith.constant 0 : i32
    return %arg0, %c0_i32 : i32, i32
  }
}

</mosaic_0001>

<bundles_post_ra>
// kernel: tpu_custom_call.1
= control target key start
LH: loop header
LB: loop body
LE: loop exit
PB: predicated region body
PF: predicated region fallthrough
CT: control target
= control target key end

     0   :  { %10 = vsyncpa [#allocation3], 0  ;;  %s437_s0 = inlined_call_operand.hbm [shape: f32[8,128], index: 0, kind: input, shape index: {}]   ;;  %s438_s1 = inlined_call_operand.hbm [shape: f32[128,128], index: 1, kind: input, shape index: {}]   ;;  %s439_s2 = inlined_call_operand.vmem [shape: f32[1,128], index: 2, kind: input, shape index: {}]   ;;  %s440_s3 = inlined_call_operand.vmem [shape: f32[1,128], index: 3, kind: input, shape index: {}]   ;;  %s441_s4 = inlined_call_operand.vmem [shape: f32[1,128], index: 4, kind: input, shape index: {}]   ;;  %s442_s5 = inlined_call_operand.hbm [shape: f32[8,128], index: 5, kind: output, shape index: {}]  }
   0x1   :  { %11 = vsyncpa [#allocation6], 0 }
   0x2   :  { %12 = vsyncpa [#allocation4], 0  ;;  %s347_s18 = smov [#allocation2]   ;;  %s348_s20 = smov [#allocation5]  }
   0x3   :  { %s19_s19 = sshll.u32 %s347_s18, 4  ;;  %s28_s21 = sshll.u32 %s348_s20, 4  ;;  %s20_s19 = int_to_ptr.vmem [resolvable:$true] %s19_s19  ;;  %s385_s21 = int_to_ptr.vmem [resolvable:$true] %s28_s21 }
   0x4   :  { %s275_s24 = scalar_lea.hbm %s437_s0, 128 }
   0x5   :  { %p276_p0 = scmp.ne.s32.totalorder %s437_s0, %s275_s24  ;;  %p279_p1 = scmp.lt.u32.totalorder %s275_s24, %s437_s0 }
   0x7   :  { %p281_p2 = pnand %p279_p1, %p276_p0 }
   0x9   :  { %284 = shalt.err (!%p281_p2)
}
   0xa   :  { %s285_s29 = scalar_lea.vmem %s20_s19, 128  ;;  %p290_p4 = scmp.lt.s32.totalorder %s20_s19, %s20_s19 }
   0xb   :  { %p286_p3 = scmp.ne.s32.totalorder %s20_s19, %s285_s29  ;;  %p291_p5 = scmp.lt.s32.totalorder %s285_s29, %s285_s29 }
   0xd   :  { %p292_p6 = por %p291_p5, %p290_p4 }
   0xf   :  { %p293_p7 = pnand %p292_p6, %p286_p3 }
  0x11   :  { %296 = shalt.err (!%p293_p7)
}
  0x12   :  { %22 = dma.hbm_to_vmem [thread:$0]  %s437_s0, 128, %s20_s19, [#allocation3]  }
  0x13   :  { %s297_s9 = scalar_lea.hbm %s438_s1, 2048 }
  0x14   :  { %p298_p8 = scmp.ne.s32.totalorder %s438_s1, %s297_s9  ;;  %p301_p9 = scmp.lt.u32.totalorder %s297_s9, %s438_s1 }
  0x16   :  { %p303_p10 = pnand %p301_p9, %p298_p8 }
  0x18   :  { %306 = shalt.err (!%p303_p10)
}
  0x19   :  { %s307_s14 = scalar_lea.vmem %s385_s21, 2048  ;;  %p312_p12 = scmp.lt.s32.totalorder %s385_s21, %s385_s21 }
  0x1a   :  { %p308_p11 = scmp.ne.s32.totalorder %s385_s21, %s307_s14  ;;  %p313_p13 = scmp.lt.s32.totalorder %s307_s14, %s307_s14 }
  0x1c   :  { %p314_p0 = por %p313_p13, %p312_p12 }
  0x1e   :  { %p315_p1 = pnand %p314_p0, %p308_p11 }
  0x20   :  { %318 = shalt.err (!%p315_p1)
}
  0x21   :  { %s349_s0 = smov 128   ;;  %s350_s15 = smov 8  }
  0x22   :  { %34 = dma.hbm_to_vmem [thread:$0]  %s438_s1, 2048, %s385_s21, [#allocation6], %s349_s0, %s349_s0, %s350_s15  }
  0x23   :  { %341 = dma.done.wait [#allocation3], 128  }
  0x24   :  { %342 = vsyncadd [#allocation3], 4294967168 }
  0x25   :  { %343 = dma.done.wait [#allocation6], 2048  }
  0x26   :  { %344 = vsyncadd [#allocation6], 4294965248  ;;  %v351_v0 = vmov 0.0|0.0   ;;  %vm352_vm0 = vmmov 0   ;;  %v353_v1 = vmov 0.0   ;;  %v48_v2 = vld [vmem:[#allocation5] sm:$0xff] }
  0x27   :  { %241 = vmatprep.subr.bf16.mxu0 %v351_v0  ;;  %238 = vmatprep.mubr.msk.f32.mxu0 %vm352_vm0, %v353_v1  ;;  %v49_v3 = vld [vmem:[#allocation5 + $0x8] sm:$0xff]  ;;  %v50_v4 = vld [vmem:[#allocation5 + $0x10] sm:$0xff]  ;;  %v51_v6 = vld [vmem:[#allocation5 + $0x18] sm:$0xff]  ;;  %s354_s22 = smov [#allocation7]  }
  0x28   :  { %v242_v5 = vpack.c.bf16 %v49_v3, %v48_v2  ;;  %v245_v7 = vpack.c.bf16 %v51_v6, %v50_v4  ;;  %v52_v8 = vld [vmem:[#allocation5 + $0x20] sm:$0xff]  ;;  %v53_v9 = vld [vmem:[#allocation5 + $0x28] sm:$0xff]  ;;  %v54_v11 = vld [vmem:[#allocation5 + $0x30] sm:$0xff]  ;;  %s176_s23 = sshll.u32 %s354_s22, 4  ;;  %s177_s23 = int_to_ptr.vmem [resolvable:$true] %s176_s23 }
  0x29   :  { %v248_v10 = vpack.c.bf16 %v53_v9, %v52_v8  ;;  %v55_v12 = vld [vmem:[#allocation5 + $0x38] sm:$0xff]  ;;  %v56_v14 = vld [vmem:[#allocation5 + $0x40] sm:$0xff]  ;;  %v57_v15 = vld [vmem:[#allocation5 + $0x48] sm:$0xff]  ;;  %s319_s24 = scalar_lea.vmem %s177_s23, 128  ;;  %p324_p3 = scmp.lt.s32.totalorder %s177_s23, %s177_s23 }
  0x2a   :  { %243 = vmatpush3.bf16.msra.mxu0 %v242_v5  ;;  %v251_v13 = vpack.c.bf16 %v55_v12, %v54_v11  ;;  %v254_v16 = vpack.c.bf16 %v57_v15, %v56_v14  ;;  %v58_v17 = vld [vmem:[#allocation5 + $0x50] sm:$0xff]  ;;  %v59_v18 = vld [vmem:[#allocation5 + $0x58] sm:$0xff]  ;;  %v60_v20 = vld [vmem:[#allocation5 + $0x60] sm:$0xff]  ;;  %p320_p2 = scmp.ne.s32.totalorder %s177_s23, %s319_s24  ;;  %p325_p4 = scmp.lt.s32.totalorder %s319_s24, %s319_s24 }
  0x2b   :  { %244 = vmatprep.subr.bf16.mxu0 %v351_v0  ;;  %v257_v19 = vpack.c.bf16 %v59_v18, %v58_v17  ;;  %v61_v21 = vld [vmem:[#allocation5 + $0x68] sm:$0xff]  ;;  %v62_v23 = vld [vmem:[#allocation5 + $0x70] sm:$0xff]  ;;  %v63_v24 = vld [vmem:[#allocation5 + $0x78] sm:$0xff] }
  0x2c   :  { %v260_v22 = vpack.c.bf16 %v61_v21, %v60_v20  ;;  %v263_v25 = vpack.c.bf16 %v63_v24, %v62_v23  ;;  %v47_v26 = vld [vmem:[#allocation2] sm:$0xff]  ;;  %p326_p5 = por %p325_p4, %p324_p3 }
  0x2d   :  { %v186_v27 = vld [vmem:[%s439_s2] ss:$0 sm:$0xff] }
  0x2e   :  { %246 = vmatpush3.bf16.msra.mxu0 %v245_v7  ;;  %v187_v39 = vld [vmem:[%s440_s3] ss:$0 sm:$0xff]  ;;  %p327_p6 = pnand %p326_p5, %p320_p2 }
  0x2f   :  { %247 = vmatprep.subr.bf16.mxu0 %v351_v0  ;;  %v188_v41 = vld [vmem:[%s441_s4] ss:$0 sm:$0xff] }
  0x32   :  { %249 = vmatpush3.bf16.msra.mxu0 %v248_v10 }
  0x33   :  { %250 = vmatprep.subr.bf16.mxu0 %v351_v0 }
  0x36   :  { %252 = vmatpush3.bf16.msra.mxu0 %v251_v13 }
  0x37   :  { %253 = vmatprep.subr.bf16.mxu0 %v351_v0 }
  0x3a   :  { %255 = vmatpush3.bf16.msra.mxu0 %v254_v16 }
  0x3b   :  { %256 = vmatprep.subr.bf16.mxu0 %v351_v0 }
  0x3e   :  { %258 = vmatpush3.bf16.msra.mxu0 %v257_v19 }
  0x3f   :  { %259 = vmatprep.subr.bf16.mxu0 %v351_v0 }
  0x42   :  { %261 = vmatpush3.bf16.msra.mxu0 %v260_v22 }
  0x43   :  { %262 = vmatprep.subr.bf16.mxu0 %v351_v0 }
  0x46   :  { %264 = vmatpush3.bf16.msra.mxu0 %v263_v25 }
  0x49   :  { %239 = vmatmul.mubr.f32.vlgmr.msra.gmra.mrb[0].mxu0 %v47_v26 }
 0x11c   :  { %v137_v28 = vpop.f32.mrb[0].mxu0 }
 0x11d   :  { %v138_v29 = vadd.f32 %v186_v27, %v137_v28  ;;  %v240_v30 = vpop.f32.mrb[1].mxu0 }
 0x11f   :  { %143 = vadd.xlane.f32.xlu0 %v138_v29 }
 0x1ac   :  { %v144_v31 = vpop.xlane.xlu0 %143 }
 0x1ad   :  { %v145_v32 = vmul.f32 0.0078125, %v144_v31 }
 0x1af   :  { %v146_v33 = vsub.f32 %v138_v29, %v145_v32 }
 0x1b1   :  { %v147_v34 = vmul.f32 %v146_v33, %v146_v33 }
 0x1b3   :  { %148 = vadd.xlane.f32.xlu0 %v147_v34 }
 0x240   :  { %v149_v35 = vpop.xlane.xlu0 %148 }
 0x241   :  { %v150_v36 = vmul.f32 0.0078125, %v149_v35 }
 0x243   :  { %v151_v37 = vadd.f32 1e-05, %v150_v36 }
 0x245   :  { %273 = vrsqrt.f32 %v151_v37 }
 0x24f   :  { %v274_v38 = vpop.eup %273 }
 0x250   :  { %v153_v40 = vmul.f32 %v274_v38, %v146_v33 }
 0x252   :  { %v160_v42 = vmul.f32 %v187_v39, %v153_v40 }
 0x254   :  { %v167_v43 = vadd.f32 %v188_v41, %v160_v42 }
 0x256   :  { %v168_v44 = vmax.f32 %v167_v43, 0.0 }
 0x258   :  { %169 = vst [vmem:[#allocation7] sm:$0xff] %v168_v44 }
 0x259   :  { %330 = shalt.err (!%p327_p6)
}
 0x25a   :  { %s331_s26 = scalar_lea.hbm %s442_s5, 128 }
 0x25b   :  { %p332_p7 = scmp.ne.s32.totalorder %s442_s5, %s331_s26  ;;  %p335_p8 = scmp.lt.u32.totalorder %s331_s26, %s442_s5 }
 0x25d   :  { %p337_p9 = pnand %p335_p8, %p332_p7 }
 0x25f   :  { %340 = shalt.err (!%p337_p9)
}
 0x260   :  { %179 = dma.vmem_to_hbm [thread:$0]  %s177_s23, 128, %s442_s5, [#allocation4]  }
 0x261   :  { %345 = dma.done.wait [#allocation4], 128  }
 0x262   :  { %346 = vsyncadd [#allocation4], 4294967168 }
 0x263   :  { %183 = vsyncpa [#allocation3], 1 }
 0x264   :  { %184 = vsyncpa [#allocation6], 1 }
 0x265   :  { %185 = vsyncpa [#allocation4], 1 }

</bundles_post_ra>
